<compile_context>
chip_gen: v6e
topology: v6e:2x2x1
jax: 0.10.0
libtpu: 0.0.40
codegen_flags: <defaults>
</compile_context>

<pallas_src>
import jax
import jax.numpy as jnp
from jax.experimental import pallas as pl
from jax.experimental.pallas import tpu as pltpu


def _round_up(x, m):
    return ((x + m - 1) // m) * m


def _pick_tile(dim_pad, max_tile, align):
    """Largest multiple of `align` that divides `dim_pad` and is <= max_tile."""
    best = align
    t = align
    cap = min(max_tile, dim_pad)
    while t <= cap:
        if dim_pad % t == 0:
            best = t
        t += align
    return best


def _dense_kernel_f32(x_ref, w_ref, b_ref, o_ref):
    # f32 output: accumulate straight into the resident output tile
    # (no scratch accumulator, no finalize cast/copy).
    k = pl.program_id(2)

    @pl.when(k == 0)
    def _():
        o_ref[...] = jnp.zeros_like(o_ref)

    o_ref[...] += jnp.dot(x_ref[...], w_ref[...],
                          preferred_element_type=jnp.float32)

    @pl.when(k == pl.num_programs(2) - 1)
    def _():
        o_ref[...] += b_ref[...]          # bias added once per output tile


def _dense_kernel_acc(x_ref, w_ref, b_ref, o_ref, acc_ref):
    # Narrow output dtype: f32 VMEM accumulator, cast-store on last K step.
    k = pl.program_id(2)

    @pl.when(k == 0)
    def _():
        acc_ref[...] = jnp.zeros_like(acc_ref)

    acc_ref[...] += jnp.dot(x_ref[...], w_ref[...],
                            preferred_element_type=jnp.float32)

    @pl.when(k == pl.num_programs(2) - 1)
    def _():
        o_ref[...] = (acc_ref[...] + b_ref[...]).astype(o_ref.dtype)


class DensePallas:
    """Equivalent of `nn.Linear(D_in, D_out)(x)[..., None, None]`.

    Parameters are prepared (transposed / padded / optionally cast) once at
    construction; __call__ only pads the activation and launches the kernel.
    """

    def __init__(self, weight, bias, *, compute_dtype=None,
                 tm=512, tn=512, tk=1024):
        D_out, D_in = weight.shape
        self.D_in, self.D_out = D_in, D_out
        self.compute_dtype = compute_dtype
        self.tm, self.tn = tm, tn

        k_pad = _round_up(D_in, 128)    # lane alignment (contraction dim)
        n_pad = _round_up(D_out, 128)   # lane-dense output tiles
        self.k_pad, self.n_pad = k_pad, n_pad
        # Full K in one tile when it fits (<= 2048), else ~1024-wide tiles that
        # divide k_pad (fewer K steps -> fewer accumulator RMW passes).
        self.tk_e = _pick_tile(k_pad, k_pad if k_pad <= 2048 else tk, 128)

        # One-time relayout, hoisted out of the forward pass: transpose to
        # [D_in, D_out] (so the kernel needs no per-K-step transpose) and pad
        # to lane multiples once.
        w_dtype = compute_dtype if compute_dtype is not None else weight.dtype
        w_t = jnp.asarray(weight).T.astype(w_dtype)
        if (k_pad, n_pad) != (D_in, D_out):
            w_t = jnp.pad(w_t, ((0, k_pad - D_in), (0, n_pad - D_out)))
        self.w_p = w_t

        b = jnp.asarray(bias).astype(jnp.float32)
        if n_pad != D_out:
            b = jnp.pad(b, (0, n_pad - D_out))
        self.b_p = b.reshape(1, n_pad)

    def __call__(self, x):
        B, D_in = x.shape
        assert D_in == self.D_in, (D_in, self.D_in)
        out_dtype = x.dtype
        x_in = x if self.compute_dtype is None else x.astype(self.compute_dtype)

        # dtype-aware sublane rounding: sub-32-bit dtypes pack along sublanes.
        in_b = jnp.dtype(x_in.dtype).itemsize
        sub = {4: 8, 2: 16, 1: 32}.get(in_b, 8)
        m_pad = _round_up(B, sub)
        tm_e = _pick_tile(m_pad, self.tm, sub)

        k_pad, n_pad, tk_e = self.k_pad, self.n_pad, self.tk_e
        tn_e = _pick_tile(n_pad, self.tn, 128)

        # v7x megacore: if the (M,N) grid would be a single tile, split N so
        # the second TensorCore has work (harmless on single-TC v5e/v6e).
        if m_pad // tm_e == 1 and n_pad // tn_e == 1 and n_pad >= 256:
            tn_e = _pick_tile(n_pad, n_pad // 2, 128)

        grid = (m_pad // tm_e, n_pad // tn_e, k_pad // tk_e)

        x_p = x_in if (m_pad == B and k_pad == D_in) else jnp.pad(
            x_in, ((0, m_pad - B), (0, k_pad - D_in)))

        f32_out = out_dtype == jnp.float32
        kernel = _dense_kernel_f32 if f32_out else _dense_kernel_acc
        scratch = [] if f32_out else [pltpu.VMEM((tm_e, tn_e), jnp.float32)]

        # VMEM budget: double-buffered inputs/output (+ f32 acc if needed).
        w_b = jnp.dtype(self.w_p.dtype).itemsize
        out_b = jnp.dtype(out_dtype).itemsize
        vmem_need = (2 * (tm_e * tk_e * in_b + tk_e * tn_e * w_b + tn_e * 4)
                     + 2 * tm_e * tn_e * out_b
                     + (0 if f32_out else tm_e * tn_e * 4))
        # <=48 MiB keeps headroom inside v7x's 64 MiB physical VMEM.
        vmem_limit = int(min(max(vmem_need + (4 << 20), 16 << 20), 48 << 20))

        cost = pl.CostEstimate(
            flops=2 * B * self.D_in * self.D_out,
            transcendentals=0,
            bytes_accessed=(x.size * jnp.dtype(x.dtype).itemsize
                            + self.w_p.size * w_b
                            + self.b_p.size * 4
                            + B * self.D_out * out_b))

        out = pl.pallas_call(
            kernel,
            out_shape=jax.ShapeDtypeStruct((m_pad, n_pad), out_dtype),
            grid_spec=pltpu.PrefetchScalarGridSpec(
                num_scalar_prefetch=0,
                grid=grid,
                in_specs=[
                    pl.BlockSpec((tm_e, tk_e), lambda i, j, k: (i, k)),  # x
                    pl.BlockSpec((tk_e, tn_e), lambda i, j, k: (k, j)),  # W^T
                    pl.BlockSpec((1, tn_e), lambda i, j, k: (0, j)),     # bias
                ],
                out_specs=pl.BlockSpec((tm_e, tn_e), lambda i, j, k: (i, j)),
                scratch_shapes=scratch,
            ),
            compiler_params=pltpu.CompilerParams(
                dimension_semantics=("parallel", "parallel", "arbitrary"),
                vmem_limit_bytes=vmem_limit),
            cost_estimate=cost,
        )(x_p, self.w_p, self.b_p)

        out = out[:B, :self.D_out]
        # glue: reshape to NCHW feature maps, matching `[..., None, None]`
        return out[..., None, None]


if __name__ == "__main__":
    key = jax.random.PRNGKey(0)
    kx, kw, kb, kx2, kw2, kb2 = jax.random.split(key, 6)

    # --- small shapes implied by the module's forward: x is [B, input_dim] ---
    B, D_in, D_out = 2, 32, 64
    x = jax.random.normal(kx, (B, D_in), dtype=jnp.float32)
    bound = 1.0 / jnp.sqrt(jnp.float32(D_in))
    weight = jax.random.uniform(kw, (D_out, D_in), jnp.float32, -bound, bound)
    bias = jax.random.uniform(kb, (D_out,), jnp.float32, -bound, bound)

    dense = DensePallas(weight, bias)
    y = jax.block_until_ready(dense(x))
    y_ref = (x @ weight.T + bias)[..., None, None]
    assert y.shape == (B, D_out, 1, 1), y.shape
    assert jnp.allclose(y, y_ref, atol=1e-5, rtol=1e-5)

    # --- multi-tile check: exercises K accumulation + N tiling (grid 1x3x4) --
    B2, K2, N2 = 64, 4096, 384
    x2 = jax.random.normal(kx2, (B2, K2), dtype=jnp.float32)
    w2 = jax.random.normal(kw2, (N2, K2), dtype=jnp.float32) * 0.02
    b2 = jax.random.normal(kb2, (N2,), dtype=jnp.float32)
    dense2 = DensePallas(w2, b2)
    y2 = jax.block_until_ready(dense2(x2))
    y2_ref = (x2 @ w2.T + b2)[..., None, None]
    assert y2.shape == (B2, N2, 1, 1), y2.shape
    assert jnp.allclose(y2, y2_ref, atol=2e-2, rtol=2e-2), float(
        jnp.max(jnp.abs(y2 - y2_ref)))

    # --- opt-in bf16-compute path (MXU-native inputs, f32 accumulation) ------
    dense2_bf16 = DensePallas(w2, b2, compute_dtype=jnp.bfloat16)
    y3 = jax.block_until_ready(dense2_bf16(x2))
    assert jnp.allclose(y3, y2_ref, atol=5e-2, rtol=5e-2), float(
        jnp.max(jnp.abs(y3 - y2_ref)))

    print("KERNEL_OK")
</pallas_src>

<mosaic_0001>
module attributes {stable_mosaic.version = 11 : i64} {
  func.func @_dense_kernel_f32(%arg0: i32, %arg1: i32, %arg2: i32, %arg3: memref<8x128xf32, #tpu.memory_space<vmem>>, %arg4: memref<128x128xf32, #tpu.memory_space<vmem>>, %arg5: memref<1x128xf32, #tpu.memory_space<vmem>>, %arg6: memref<8x128xf32, #tpu.memory_space<vmem>>) attributes {dimension_semantics = [#tpu.dimension_semantics<parallel>, #tpu.dimension_semantics<parallel>, #tpu.dimension_semantics<arbitrary>], iteration_bounds = array<i64: 1, 1, 1>, scalar_prefetch = 0 : i64, scratch_operands = 0 : i64, tpu.core_type = #tpu.core_type<tc>, window_params = [{transform_indices = @transform_0, window_bounds = array<i64: 8, 128>}, {transform_indices = @transform_1, window_bounds = array<i64: 128, 128>}, {transform_indices = @transform_2, window_bounds = array<i64: 1, 128>}, {transform_indices = @transform_3, window_bounds = array<i64: 8, 128>}]} {
    %c0_i32 = arith.constant 0 : i32
    %0 = arith.cmpi eq, %arg2, %c0_i32 : i32
    %1 = arith.extui %0 : i1 to i32
    %c0_i32_0 = arith.constant 0 : i32
    %2 = arith.cmpi ne, %1, %c0_i32_0 : i32
    scf.if %2 {
      %cst_10 = arith.constant 0.000000e+00 : f32
      %12 = vector.broadcast %cst_10 : f32 to vector<8x128xf32>
      %c0_11 = arith.constant 0 : index
      %c0_12 = arith.constant 0 : index
      %13 = vector.load %arg6[%c0_11, %c0_12] : memref<8x128xf32, #tpu.memory_space<vmem>>, vector<8x128xf32>
      tpu.vector_store %arg6[%c0_11, %c0_12], %12 {strides = array<i32>} : memref<8x128xf32, #tpu.memory_space<vmem>>, vector<8x128xf32>,
    } else {
    }
    %c0 = arith.constant 0 : index
    %c0_1 = arith.constant 0 : index
    %3 = vector.load %arg6[%c0, %c0_1] : memref<8x128xf32, #tpu.memory_space<vmem>>, vector<8x128xf32>
    %c0_2 = arith.constant 0 : index
    %c0_3 = arith.constant 0 : index
    %4 = vector.load %arg3[%c0_2, %c0_3] : memref<8x128xf32, #tpu.memory_space<vmem>>, vector<8x128xf32>
    %c0_4 = arith.constant 0 : index
    %c0_5 = arith.constant 0 : index
    %5 = vector.load %arg4[%c0_4, %c0_5] : memref<128x128xf32, #tpu.memory_space<vmem>>, vector<128x128xf32>
    %cst = arith.constant dense<0.000000e+00> : vector<8x128xf32>
    %6 = tpu.matmul %4, %5, %cst {dimension_numbers = #tpu.dot_dimension_numbers<[1], [0], [0], [1], [0, 0, 1, 1], [], []>} : vector<8x128xf32>, vector<128x128xf32>, vector<8x128xf32> -> vector<8x128xf32>
    %7 = arith.addf %3, %6 : vector<8x128xf32>
    %c0_6 = arith.constant 0 : index
    %c0_7 = arith.constant 0 : index
    %8 = vector.load %arg6[%c0_6, %c0_7] : memref<8x128xf32, #tpu.memory_space<vmem>>, vector<8x128xf32>
    tpu.vector_store %arg6[%c0_6, %c0_7], %7 {strides = array<i32>} : memref<8x128xf32, #tpu.memory_space<vmem>>, vector<8x128xf32>,
    %c0_i32_8 = arith.constant 0 : i32
    %9 = arith.cmpi eq, %arg2, %c0_i32_8 : i32
    %10 = arith.extui %9 : i1 to i32
    %c0_i32_9 = arith.constant 0 : i32
    %11 = arith.cmpi ne, %10, %c0_i32_9 : i32
    scf.if %11 {
      %c0_10 = arith.constant 0 : index
      %c0_11 = arith.constant 0 : index
      %12 = vector.load %arg6[%c0_10, %c0_11] : memref<8x128xf32, #tpu.memory_space<vmem>>, vector<8x128xf32>
      %c0_12 = arith.constant 0 : index
      %c0_13 = arith.constant 0 : index
      %13 = vector.load %arg5[%c0_12, %c0_13] : memref<1x128xf32, #tpu.memory_space<vmem>>, vector<1x128xf32>
      %14 = vector.broadcast %13 : vector<1x128xf32> to vector<8x128xf32>
      %15 = arith.addf %12, %14 : vector<8x128xf32>
      %c0_14 = arith.constant 0 : index
      %c0_15 = arith.constant 0 : index
      %16 = vector.load %arg6[%c0_14, %c0_15] : memref<8x128xf32, #tpu.memory_space<vmem>>, vector<8x128xf32>
      tpu.vector_store %arg6[%c0_14, %c0_15], %15 {strides = array<i32>} : memref<8x128xf32, #tpu.memory_space<vmem>>, vector<8x128xf32>,
    } else {
    }
    return
  }
  func.func @transform_0(%arg0: i32, %arg1: i32, %arg2: i32) -> (i32, i32) {
    %c0_i32 = arith.constant 0 : i32
    return %arg0, %arg2 : i32, i32
  }
  func.func @transform_1(%arg0: i32, %arg1: i32, %arg2: i32) -> (i32, i32) {
    %c0_i32 = arith.constant 0 : i32
    return %arg2, %arg1 : i32, i32
  }
  func.func @transform_2(%arg0: i32, %arg1: i32, %arg2: i32) -> (i32, i32) {
    %c0_i32 = arith.constant 0 : i32
    %c0_i32_0 = arith.constant 0 : i32
    return %c0_i32, %arg1 : i32, i32
  }
  func.func @transform_3(%arg0: i32, %arg1: i32, %arg2: i32) -> (i32, i32) {
    %c0_i32 = arith.constant 0 : i32
    return %arg0, %arg1 : i32, i32
  }
}

</mosaic_0001>

<bundles_post_ra>
// kernel: tpu_custom_call.1
= control target key start
LH: loop header
LB: loop body
LE: loop exit
PB: predicated region body
PF: predicated region fallthrough
CT: control target
= control target key end

     0   :  { %8 = vsyncpa [#allocation3], 0  ;;  %s330_s0 = inlined_call_operand.hbm [shape: f32[8,128], index: 0, kind: input, shape index: {}]   ;;  %s331_s1 = inlined_call_operand.hbm [shape: f32[128,128], index: 1, kind: input, shape index: {}]   ;;  %s332_s2 = inlined_call_operand.vmem [shape: f32[1,128], index: 2, kind: input, shape index: {}]   ;;  %s333_s3 = inlined_call_operand.hbm [shape: f32[8,128], index: 3, kind: output, shape index: {}]  }
   0x1   :  { %9 = vsyncpa [#allocation6], 0 }
   0x2   :  { %10 = vsyncpa [#allocation4], 0  ;;  %s291_s12 = smov [#allocation2]   ;;  %s292_s14 = smov [#allocation5]  }
   0x3   :  { %s17_s13 = sshll.u32 %s291_s12, 4  ;;  %s26_s15 = sshll.u32 %s292_s14, 4  ;;  %s18_s13 = int_to_ptr.vmem [resolvable:$true] %s17_s13  ;;  %s27_s15 = int_to_ptr.vmem [resolvable:$true] %s26_s15 }
   0x4   :  { %s233_s16 = scalar_lea.vmem %s18_s13, 128  ;;  %p238_p1 = scmp.lt.s32.totalorder %s18_s13, %s18_s13 }
   0x5   :  { %p234_p0 = scmp.ne.s32.totalorder %s18_s13, %s233_s16  ;;  %p239_p2 = scmp.lt.s32.totalorder %s233_s16, %s233_s16 }
   0x7   :  { %p240_p3 = por %p239_p2, %p238_p1 }
   0x9   :  { %p241_p4 = pnand %p240_p3, %p234_p0 }
   0xb   :  { %244 = shalt.err (!%p241_p4)
}
   0xc   :  { %20 = dma.hbm_to_vmem [thread:$0]  %s330_s0, 128, %s18_s13, [#allocation3]  }
   0xd   :  { %s253_s19 = scalar_lea.vmem %s27_s15, 2048  ;;  %p258_p6 = scmp.lt.s32.totalorder %s27_s15, %s27_s15 }
   0xe   :  { %p254_p5 = scmp.ne.s32.totalorder %s27_s15, %s253_s19  ;;  %p259_p7 = scmp.lt.s32.totalorder %s253_s19, %s253_s19 }
  0x10   :  { %p260_p8 = por %p259_p7, %p258_p6 }
  0x12   :  { %p261_p9 = pnand %p260_p8, %p254_p5 }
  0x14   :  { %264 = shalt.err (!%p261_p9)
}
  0x15   :  { %s293_s20 = smov 128   ;;  %s294_s21 = smov 8  }
  0x16   :  { %32 = dma.hbm_to_vmem [thread:$0]  %s331_s1, 2048, %s27_s15, [#allocation6], %s293_s20, %s293_s20, %s294_s21  }
  0x17   :  { %285 = dma.done.wait [#allocation3], 128  }
  0x18   :  { %286 = vsyncadd [#allocation3], 4294967168 }
  0x19   :  { %287 = dma.done.wait [#allocation6], 2048  }
  0x1a   :  { %288 = vsyncadd [#allocation6], 4294965248  ;;  %v295_v0 = vmov 0.0   ;;  %vm296_vm0 = vmmov 0   ;;  %v63_v1 = vld [vmem:[#allocation5 + $0x78] sm:$0xff]  ;;  %v62_v2 = vld [vmem:[#allocation5 + $0x70] sm:$0xff] }
  0x1b   :  { %183 = vmatprep.subr.mxu0 %v295_v0  ;;  %215 = vmatprep.mubr.msk.f32.mxu0 %vm296_vm0, %v295_v0  ;;  %v61_v3 = vld [vmem:[#allocation5 + $0x68] sm:$0xff]  ;;  %v60_v4 = vld [vmem:[#allocation5 + $0x60] sm:$0xff]  ;;  %v59_v5 = vld [vmem:[#allocation5 + $0x58] sm:$0xff]  ;;  %s297_s24 = smov [#allocation7]  }
  0x1c   :  { %184 = vmatpush3.msra.mxu0 %v63_v1  ;;  %v58_v6 = vld [vmem:[#allocation5 + $0x50] sm:$0xff]  ;;  %v57_v7 = vld [vmem:[#allocation5 + $0x48] sm:$0xff]  ;;  %v56_v8 = vld [vmem:[#allocation5 + $0x40] sm:$0xff]  ;;  %s155_s25 = sshll.u32 %s297_s24, 4  ;;  %s156_s25 = int_to_ptr.vmem [resolvable:$true] %s155_s25 }
  0x1d   :  { %185 = vmatprep.subr.mxu0 %v295_v0  ;;  %v55_v9 = vld [vmem:[#allocation5 + $0x38] sm:$0xff]  ;;  %v54_v10 = vld [vmem:[#allocation5 + $0x30] sm:$0xff]  ;;  %v53_v11 = vld [vmem:[#allocation5 + $0x28] sm:$0xff]  ;;  %s265_s26 = scalar_lea.vmem %s156_s25, 128  ;;  %p270_p11 = scmp.lt.s32.totalorder %s156_s25, %s156_s25 }
  0x1e   :  { %186 = vmatpush3.msra.mxu0 %v62_v2  ;;  %v52_v12 = vld [vmem:[#allocation5 + $0x20] sm:$0xff]  ;;  %v51_v13 = vld [vmem:[#allocation5 + $0x18] sm:$0xff]  ;;  %v50_v14 = vld [vmem:[#allocation5 + $0x10] sm:$0xff]  ;;  %p266_p10 = scmp.ne.s32.totalorder %s156_s25, %s265_s26  ;;  %p271_p12 = scmp.lt.s32.totalorder %s265_s26, %s265_s26 }
  0x1f   :  { %187 = vmatprep.subr.mxu0 %v295_v0  ;;  %v49_v15 = vld [vmem:[#allocation5 + $0x8] sm:$0xff]  ;;  %v48_v16 = vld [vmem:[#allocation5] sm:$0xff]  ;;  %v47_v17 = vld [vmem:[#allocation2] sm:$0xff] }
  0x20   :  { %188 = vmatpush3.msra.mxu0 %v61_v3  ;;  %v165_v19 = vld [vmem:[%s332_s2] ss:$0 sm:$0xff]  ;;  %p272_p13 = por %p271_p12, %p270_p11 }
  0x21   :  { %189 = vmatprep.subr.mxu0 %v295_v0 }
  0x22   :  { %190 = vmatpush3.msra.mxu0 %v60_v4  ;;  %p273_p0 = pnand %p272_p13, %p266_p10 }
  0x23   :  { %191 = vmatprep.subr.mxu0 %v295_v0 }
  0x24   :  { %192 = vmatpush3.msra.mxu0 %v59_v5 }
  0x25   :  { %193 = vmatprep.subr.mxu0 %v295_v0 }
  0x26   :  { %194 = vmatpush3.msra.mxu0 %v58_v6 }
  0x27   :  { %195 = vmatprep.subr.mxu0 %v295_v0 }
  0x28   :  { %196 = vmatpush3.msra.mxu0 %v57_v7 }
  0x29   :  { %197 = vmatprep.subr.mxu0 %v295_v0 }
  0x2a   :  { %198 = vmatpush3.msra.mxu0 %v56_v8 }
  0x2b   :  { %199 = vmatprep.subr.mxu0 %v295_v0 }
  0x2c   :  { %200 = vmatpush3.msra.mxu0 %v55_v9 }
  0x2d   :  { %201 = vmatprep.subr.mxu0 %v295_v0 }
  0x2e   :  { %202 = vmatpush3.msra.mxu0 %v54_v10 }
  0x2f   :  { %203 = vmatprep.subr.mxu0 %v295_v0 }
  0x30   :  { %204 = vmatpush3.msra.mxu0 %v53_v11 }
  0x31   :  { %205 = vmatprep.subr.mxu0 %v295_v0 }
  0x32   :  { %206 = vmatpush3.msra.mxu0 %v52_v12 }
  0x33   :  { %207 = vmatprep.subr.mxu0 %v295_v0 }
  0x34   :  { %208 = vmatpush3.msra.mxu0 %v51_v13 }
  0x35   :  { %209 = vmatprep.subr.mxu0 %v295_v0 }
  0x36   :  { %210 = vmatpush3.msra.mxu0 %v50_v14 }
  0x37   :  { %211 = vmatprep.subr.mxu0 %v295_v0 }
  0x38   :  { %212 = vmatpush3.msra.mxu0 %v49_v15 }
  0x39   :  { %213 = vmatprep.subr.mxu0 %v295_v0 }
  0x3a   :  { %214 = vmatpush3.msra.mxu0 %v48_v16 }
  0x3b   :  { %216 = vmatmul.mubr.f32.vlgmr.msra.gmra.mxu0 %v47_v17 }
  0xfb   :  { %v130_v18 = vpop.f32.mrf.mxu0 }
  0xfc   :  { %v147_v21 = vadd.f32 %v165_v19, %v130_v18 }
  0xfd   :  { %v217_v20 = vpop.f32.mrf.mxu0 }
  0xfe   :  { %148 = vst [vmem:[#allocation7] sm:$0xff] %v147_v21 }
  0xff   :  { %276 = shalt.err (!%p273_p0)
}
 0x100   :  { %158 = dma.vmem_to_hbm [thread:$0]  %s156_s25, 128, %s333_s3, [#allocation4]  }
 0x101   :  { %289 = dma.done.wait [#allocation4], 128  }
 0x102   :  { %290 = vsyncadd [#allocation4], 4294967168 }
 0x103   :  { %162 = vsyncpa [#allocation3], 1 }
 0x104   :  { %163 = vsyncpa [#allocation6], 1 }
 0x105   :  { %164 = vsyncpa [#allocation4], 1 }

</bundles_post_ra>
